<compile_context>
chip_gen: v7x
topology: tpu7x:2x2x1
jax: 0.10.0
libtpu: 0.0.40
codegen_flags: <defaults>
</compile_context>

<pallas_src>
import jax
import jax.numpy as jnp
from jax.experimental import pallas as pl
from jax.experimental.pallas import tpu as pltpu

LANES = 128
CHUNK_ROWS = 512                   # in-kernel chunk: bounds temporary liveness
TARGET_TILE_BYTES = 4 * 1024 * 1024  # ~4 MiB / input / pipeline buffer

FOCAL_ALPHA = 1.4
FOCAL_GAMMA = 2.0                  # exponent is exactly 2 -> square, not pow
FOCAL_EPS = 1e-8
DICE_EPS = 1e-7


def _cdiv(a, b):
    return -(-a // b)


def _num_tensorcores():
    """Conservative TensorCore count: returns 1 unless confidently detected."""
    try:
        info = pltpu.get_tpu_info()
    except Exception:
        return 1
    for name in ("num_cores", "core_count", "num_tensorcores", "tensorcore_count"):
        v = getattr(info, name, None)
        if isinstance(v, int) and 1 <= v <= 8:
            return v
    return 1


def _make_kernel(rows_valid, tile_rows, chunk_rows, n_inner, n_grid_tiles):
    """Kernel accumulating (4, 8, 128) partial sums per outer grid block:
       [gt*p, p, gt, (1-pt)^2*log(pt)*w] summed over the tile (VPU only)."""
    n_chunks = tile_rows // chunk_rows
    first_ragged = rows_valid // tile_rows          # tiles >= this need masking
    needs_mask = n_grid_tiles * tile_rows > rows_valid

    def accumulate(pr_ref, gt_ref, out_ref, row_offset):
        def chunk_body(r0):
            pr = pr_ref[pl.ds(r0, chunk_rows), :].astype(jnp.float32)
            gt = gt_ref[pl.ds(r0, chunk_rows), :].astype(jnp.float32)
            p = jax.nn.sigmoid(pr)                   # EUP: exp + recip
            if row_offset is not None:
                # jnp.where also scrubs any NaN/Inf garbage in the padded rows.
                row = jax.lax.broadcasted_iota(jnp.int32, (chunk_rows, LANES), 0)
                valid = row < (rows_valid - (row_offset + r0))
                gt = jnp.where(valid, gt, 0.0)
                p = jnp.where(valid, p, 0.0)
            gp = gt * p
            # FocalLoss2d elementwise term (gamma == 2 -> square; the leading
            # minus sign is folded into the final scalar combine).
            po = jnp.clip(p, FOCAL_EPS, 1.0 - FOCAL_EPS)
            tg = jnp.clip(gt, FOCAL_EPS, 1.0 - FOCAL_EPS)
            pt = (1.0 - po) + tg * (2.0 * po - 1.0)
            one_m_pt = 1.0 - pt
            w = (2.0 - FOCAL_ALPHA) + tg * (2.0 * FOCAL_ALPHA - 2.0)
            f = (one_m_pt * one_m_pt) * jnp.log(pt) * w   # EUP: log
            if row_offset is not None:
                f = jnp.where(valid, f, 0.0)

            def fold(x):                             # (chunk,128) -> (8,128)
                return jnp.sum(x.reshape(-1, 8, LANES), axis=0)

            out_ref[0, 0, :, :] += fold(gp)          # tp partial
            out_ref[0, 1, :, :] += fold(p)           # sum(p) partial
            out_ref[0, 2, :, :] += fold(gt)          # sum(gt) partial
            out_ref[0, 3, :, :] += fold(f)           # focal partial (unnegated)

        if n_chunks == 1:
            chunk_body(0)
        else:
            @pl.loop(0, n_chunks)
            def _(c):
                chunk_body(pl.multiple_of(c * chunk_rows, chunk_rows))

    def kernel(pr_ref, gt_ref, out_ref):
        i = pl.program_id(1)

        @pl.when(i == 0)
        def _():
            out_ref[...] = jnp.zeros_like(out_ref)

        if not needs_mask:
            accumulate(pr_ref, gt_ref, out_ref, None)
        else:
            tile_idx = pl.program_id(0) * n_inner + i
            if first_ragged > 0:
                @pl.when(tile_idx < first_ragged)
                def _():
                    accumulate(pr_ref, gt_ref, out_ref, None)

            @pl.when(tile_idx >= first_ragged)
            def _():
                accumulate(pr_ref, gt_ref, out_ref, tile_idx * tile_rows)

    return kernel


def _elem_sums_jax(pr, gt):
    """[tp, sum(p), sum(gt), sum((1-pt)^2*log(pt)*w)] for a tiny tail, pure JAX."""
    pr = pr.astype(jnp.float32)
    gt = gt.astype(jnp.float32)
    p = jax.nn.sigmoid(pr)
    po = jnp.clip(p, FOCAL_EPS, 1.0 - FOCAL_EPS)
    tg = jnp.clip(gt, FOCAL_EPS, 1.0 - FOCAL_EPS)
    pt = (1.0 - tg) * (1.0 - po) + tg * po
    w = tg * FOCAL_ALPHA + (1.0 - tg) * (2.0 - FOCAL_ALPHA)
    f = (1.0 - pt) * (1.0 - pt) * jnp.log(pt) * w
    return jnp.stack([jnp.sum(gt * p), jnp.sum(p), jnp.sum(gt), jnp.sum(f)])


def focal_bce_dice_loss(y_pr, y_gt):
    """Pallas implementation of FocalBCEDiceLoss.forward (activation='sigmoid')."""
    assert y_pr.shape == y_gt.shape
    total = int(y_pr.size)

    pr_flat = y_pr.reshape(-1)
    gt_flat = y_gt.reshape(-1)

    min_isz = min(pr_flat.dtype.itemsize, gt_flat.dtype.itemsize)
    max_isz = max(pr_flat.dtype.itemsize, gt_flat.dtype.itemsize)
    sub = {4: 8, 2: 16, 1: 32}.get(min_isz, 8)       # native sublane pack

    rows_valid = total // LANES
    main = rows_valid * LANES

    sums = jnp.zeros((4,), jnp.float32)
    if rows_valid >= sub:
        # ---- tile picking (tile_rows <= rows_valid, multiple of chunk) -----
        max_tile_rows = max(
            CHUNK_ROWS,
            (TARGET_TILE_BYTES // (LANES * max_isz)) // CHUNK_ROWS * CHUNK_ROWS)
        if rows_valid < CHUNK_ROWS:
            tile_rows = (rows_valid // sub) * sub
            chunk_rows = tile_rows
        else:
            tile_rows = min(max_tile_rows, (rows_valid // CHUNK_ROWS) * CHUNK_ROWS)
            chunk_rows = CHUNK_ROWS
        num_tiles = _cdiv(rows_valid, tile_rows)

        # ---- grid / core split ---------------------------------------------
        n_cores = _num_tensorcores()
        n_outer = min(n_cores, num_tiles) if n_cores > 1 else 1
        n_inner = _cdiv(num_tiles, n_outer)
        if n_outer > 1:
            semantics = (pltpu.CORE_PARALLEL, pltpu.ARBITRARY)
        else:
            semantics = ("arbitrary", "arbitrary")

        last_block = num_tiles - 1
        if n_outer * n_inner == num_tiles:
            in_map = lambda o, i: (o * n_inner + i, 0)
        else:
            # Clamp block index for grid tiles beyond the data (fully masked).
            in_map = lambda o, i: (jnp.minimum(o * n_inner + i, last_block), 0)

        # Zero-copy reshape when total % 128 == 0; otherwise slice off the
        # <128-element tail (handled in plain JAX below).
        if main == total:
            pr2 = pr_flat.reshape(rows_valid, LANES)
            gt2 = gt_flat.reshape(rows_valid, LANES)
        else:
            pr2 = pr_flat[:main].reshape(rows_valid, LANES)
            gt2 = gt_flat[:main].reshape(rows_valid, LANES)

        kernel = _make_kernel(rows_valid, tile_rows, chunk_rows, n_inner,
                              n_outer * n_inner)

        partials = pl.pallas_call(
            kernel,
            out_shape=jax.ShapeDtypeStruct((n_outer, 4, 8, LANES), jnp.float32),
            grid_spec=pltpu.PrefetchScalarGridSpec(
                num_scalar_prefetch=0,
                grid=(n_outer, n_inner),
                in_specs=[
                    pl.BlockSpec((tile_rows, LANES), in_map),
                    pl.BlockSpec((tile_rows, LANES), in_map),
                ],
                out_specs=pl.BlockSpec((1, 4, 8, LANES),
                                       lambda o, i: (o, 0, 0, 0)),
            ),
            compiler_params=pltpu.CompilerParams(
                dimension_semantics=semantics,
                vmem_limit_bytes=40 * 1024 * 1024),
        )(pr2, gt2)

        sums = sums + jnp.sum(partials, axis=(0, 2, 3))   # (4,)
    else:
        main = 0   # too small for even one (sub, 128) tile; do it all in JAX

    if main < total:
        sums = sums + _elem_sums_jax(pr_flat[main:], gt_flat[main:])

    tp, sp, sg, fsum = sums[0], sums[1], sums[2], sums[3]
    fp = sp - tp
    fn = sg - tp
    score = (2.0 * tp + DICE_EPS) / (2.0 * tp + fn + fp + DICE_EPS)
    dice = 1.0 - score
    focal = -fsum / jnp.float32(total)      # mean over ORIGINAL element count
    return dice + focal


def _reference_loss(y_pr, y_gt):
    """Pure-JAX reference mirroring the PyTorch module (for sanity checking)."""
    p = jax.nn.sigmoid(y_pr.astype(jnp.float32))
    g = y_gt.astype(jnp.float32)
    tp = jnp.sum(g * p)
    fp = jnp.sum(p) - tp
    fn = jnp.sum(g) - tp
    dice = 1.0 - (2.0 * tp + DICE_EPS) / (2.0 * tp + fn + fp + DICE_EPS)
    po = jnp.clip(p, FOCAL_EPS, 1.0 - FOCAL_EPS)
    tg = jnp.clip(g, FOCAL_EPS, 1.0 - FOCAL_EPS)
    pt = (1.0 - tg) * (1.0 - po) + tg * po
    focal = jnp.mean(-((1.0 - pt) ** FOCAL_GAMMA) * jnp.log(pt)
                     * (tg * FOCAL_ALPHA + (1.0 - tg) * (2.0 - FOCAL_ALPHA)))
    return dice + focal


if __name__ == "__main__":
    key = jax.random.PRNGKey(0)
    k1, k2 = jax.random.split(key)

    B, C, H, W = 2, 4, 16, 16   # NCHW, matching PyTorch convention
    y_pr = jax.random.normal(k1, (B, C, H, W), dtype=jnp.float32)
    y_gt = (jax.random.uniform(k2, (B, C, H, W)) > 0.5).astype(jnp.float32)

    loss = focal_bce_dice_loss(y_pr, y_gt)
    loss = jax.block_until_ready(loss)

    ref = _reference_loss(y_pr, y_gt)
    assert jnp.allclose(loss, ref, rtol=1e-5, atol=1e-5), (loss, ref)

    print("KERNEL_OK")
</pallas_src>

<mosaic_0001>
module attributes {stable_mosaic.version = 11 : i64} {
  func.func @kernel(%arg0: i32, %arg1: i32, %arg2: memref<16x128xf32, #tpu.memory_space<vmem>>, %arg3: memref<16x128xf32, #tpu.memory_space<vmem>>, %arg4: memref<1x4x8x128xf32, #tpu.memory_space<vmem>>) attributes {dimension_semantics = [#tpu.dimension_semantics<arbitrary>, #tpu.dimension_semantics<arbitrary>], iteration_bounds = array<i64: 1, 1>, scalar_prefetch = 0 : i64, scratch_operands = 0 : i64, tpu.core_type = #tpu.core_type<tc>, window_params = [{transform_indices = @transform_0, window_bounds = array<i64: 16, 128>}, {transform_indices = @transform_1, window_bounds = array<i64: 16, 128>}, {transform_indices = @transform_2, window_bounds = array<i64: 1, 4, 8, 128>}]} {
    %c0_i32 = arith.constant 0 : i32
    %0 = arith.cmpi eq, %arg1, %c0_i32 : i32
    %1 = arith.extui %0 : i1 to i32
    %c0_i32_0 = arith.constant 0 : i32
    %2 = arith.cmpi ne, %1, %c0_i32_0 : i32
    scf.if %2 {
      %cst_47 = arith.constant 0.000000e+00 : f32
      %69 = vector.broadcast %cst_47 : f32 to vector<1x4x8x128xf32>
      %c0_48 = arith.constant 0 : index
      %c0_49 = arith.constant 0 : index
      %c0_50 = arith.constant 0 : index
      %c0_51 = arith.constant 0 : index
      %70 = vector.load %arg4[%c0_48, %c0_49, %c0_50, %c0_51] : memref<1x4x8x128xf32, #tpu.memory_space<vmem>>, vector<1x4x8x128xf32>
      tpu.vector_store %arg4[%c0_48, %c0_49, %c0_50, %c0_51], %69 {strides = array<i32>} : memref<1x4x8x128xf32, #tpu.memory_space<vmem>>, vector<1x4x8x128xf32>,
    } else {
    }
    %c0 = arith.constant 0 : index
    %c0_1 = arith.constant 0 : index
    %3 = vector.load %arg2[%c0, %c0_1] : memref<16x128xf32, #tpu.memory_space<vmem>>, vector<16x128xf32>
    %c0_2 = arith.constant 0 : index
    %c0_3 = arith.constant 0 : index
    %4 = vector.load %arg3[%c0_2, %c0_3] : memref<16x128xf32, #tpu.memory_space<vmem>>, vector<16x128xf32>
    %5 = arith.negf %3 : vector<16x128xf32>
    %6 = math.exp %5 : vector<16x128xf32>
    %cst = arith.constant 1.000000e+00 : f32
    %7 = vector.broadcast %cst : f32 to vector<16x128xf32>
    %8 = arith.addf %7, %6 : vector<16x128xf32>
    %9 = arith.divf %7, %8 : vector<16x128xf32>
    %10 = arith.mulf %4, %9 : vector<16x128xf32>
    %cst_4 = arith.constant 9.99999993E-9 : f32
    %cst_5 = arith.constant 1.000000e+00 : f32
    %11 = vector.broadcast %cst_4 : f32 to vector<16x128xf32>
    %12 = arith.maximumf %11, %9 : vector<16x128xf32>
    %13 = vector.broadcast %cst_5 : f32 to vector<16x128xf32>
    %14 = arith.minimumf %13, %12 : vector<16x128xf32>
    %cst_6 = arith.constant 9.99999993E-9 : f32
    %cst_7 = arith.constant 1.000000e+00 : f32
    %15 = vector.broadcast %cst_6 : f32 to vector<16x128xf32>
    %16 = arith.maximumf %15, %4 : vector<16x128xf32>
    %17 = vector.broadcast %cst_7 : f32 to vector<16x128xf32>
    %18 = arith.minimumf %17, %16 : vector<16x128xf32>
    %cst_8 = arith.constant 1.000000e+00 : f32
    %19 = vector.broadcast %cst_8 : f32 to vector<16x128xf32>
    %20 = arith.subf %19, %14 : vector<16x128xf32>
    %cst_9 = arith.constant 2.000000e+00 : f32
    %21 = vector.broadcast %cst_9 : f32 to vector<16x128xf32>
    %22 = arith.mulf %21, %14 : vector<16x128xf32>
    %cst_10 = arith.constant 1.000000e+00 : f32
    %23 = vector.broadcast %cst_10 : f32 to vector<16x128xf32>
    %24 = arith.subf %22, %23 : vector<16x128xf32>
    %25 = arith.mulf %18, %24 : vector<16x128xf32>
    %26 = arith.addf %20, %25 : vector<16x128xf32>
    %cst_11 = arith.constant 1.000000e+00 : f32
    %27 = vector.broadcast %cst_11 : f32 to vector<16x128xf32>
    %28 = arith.subf %27, %26 : vector<16x128xf32>
    %cst_12 = arith.constant 8.000000e-01 : f32
    %29 = vector.broadcast %cst_12 : f32 to vector<16x128xf32>
    %30 = arith.mulf %18, %29 : vector<16x128xf32>
    %cst_13 = arith.constant 6.000000e-01 : f32
    %31 = vector.broadcast %cst_13 : f32 to vector<16x128xf32>
    %32 = arith.addf %31, %30 : vector<16x128xf32>
    %33 = arith.mulf %28, %28 : vector<16x128xf32>
    %34 = math.log %26 : vector<16x128xf32>
    %35 = arith.mulf %33, %34 : vector<16x128xf32>
    %36 = arith.mulf %35, %32 : vector<16x128xf32>
    %c0_14 = arith.constant 0 : index
    %c0_15 = arith.constant 0 : index
    %c0_16 = arith.constant 0 : index
    %c0_17 = arith.constant 0 : index
    %37 = vector.load %arg4[%c0_14, %c0_15, %c0_16, %c0_17] : memref<1x4x8x128xf32, #tpu.memory_space<vmem>>, vector<1x1x8x128xf32>
    %38 = vector.shape_cast %37 : vector<1x1x8x128xf32> to vector<8x128xf32>
    %39 = vector.shape_cast %10 : vector<16x128xf32> to vector<2x8x128xf32>
    %cst_18 = arith.constant dense<0.000000e+00> : vector<8x128xf32>
    %40 = vector.multi_reduction <add>, %39, %cst_18 [0] : vector<2x8x128xf32> to vector<8x128xf32>
    %41 = arith.addf %38, %40 : vector<8x128xf32>
    %c0_19 = arith.constant 0 : index
    %c0_20 = arith.constant 0 : index
    %c0_21 = arith.constant 0 : index
    %c0_22 = arith.constant 0 : index
    %42 = vector.load %arg4[%c0_19, %c0_20, %c0_21, %c0_22] : memref<1x4x8x128xf32, #tpu.memory_space<vmem>>, vector<1x1x8x128xf32>
    %43 = vector.shape_cast %42 : vector<1x1x8x128xf32> to vector<8x128xf32>
    %44 = vector.shape_cast %41 : vector<8x128xf32> to vector<1x1x8x128xf32>
    tpu.vector_store %arg4[%c0_19, %c0_20, %c0_21, %c0_22], %44 {strides = array<i32>} : memref<1x4x8x128xf32, #tpu.memory_space<vmem>>, vector<1x1x8x128xf32>,
    %c0_23 = arith.constant 0 : index
    %c1 = arith.constant 1 : index
    %c0_24 = arith.constant 0 : index
    %c0_25 = arith.constant 0 : index
    %45 = vector.load %arg4[%c0_23, %c1, %c0_24, %c0_25] : memref<1x4x8x128xf32, #tpu.memory_space<vmem>>, vector<1x1x8x128xf32>
    %46 = vector.shape_cast %45 : vector<1x1x8x128xf32> to vector<8x128xf32>
    %47 = vector.shape_cast %9 : vector<16x128xf32> to vector<2x8x128xf32>
    %cst_26 = arith.constant dense<0.000000e+00> : vector<8x128xf32>
    %48 = vector.multi_reduction <add>, %47, %cst_26 [0] : vector<2x8x128xf32> to vector<8x128xf32>
    %49 = arith.addf %46, %48 : vector<8x128xf32>
    %c0_27 = arith.constant 0 : index
    %c1_28 = arith.constant 1 : index
    %c0_29 = arith.constant 0 : index
    %c0_30 = arith.constant 0 : index
    %50 = vector.load %arg4[%c0_27, %c1_28, %c0_29, %c0_30] : memref<1x4x8x128xf32, #tpu.memory_space<vmem>>, vector<1x1x8x128xf32>
    %51 = vector.shape_cast %50 : vector<1x1x8x128xf32> to vector<8x128xf32>
    %52 = vector.shape_cast %49 : vector<8x128xf32> to vector<1x1x8x128xf32>
    tpu.vector_store %arg4[%c0_27, %c1_28, %c0_29, %c0_30], %52 {strides = array<i32>} : memref<1x4x8x128xf32, #tpu.memory_space<vmem>>, vector<1x1x8x128xf32>,
    %c0_31 = arith.constant 0 : index
    %c2 = arith.constant 2 : index
    %c0_32 = arith.constant 0 : index
    %c0_33 = arith.constant 0 : index
    %53 = vector.load %arg4[%c0_31, %c2, %c0_32, %c0_33] : memref<1x4x8x128xf32, #tpu.memory_space<vmem>>, vector<1x1x8x128xf32>
    %54 = vector.shape_cast %53 : vector<1x1x8x128xf32> to vector<8x128xf32>
    %55 = vector.shape_cast %4 : vector<16x128xf32> to vector<2x8x128xf32>
    %cst_34 = arith.constant dense<0.000000e+00> : vector<8x128xf32>
    %56 = vector.multi_reduction <add>, %55, %cst_34 [0] : vector<2x8x128xf32> to vector<8x128xf32>
    %57 = arith.addf %54, %56 : vector<8x128xf32>
    %c0_35 = arith.constant 0 : index
    %c2_36 = arith.constant 2 : index
    %c0_37 = arith.constant 0 : index
    %c0_38 = arith.constant 0 : index
    %58 = vector.load %arg4[%c0_35, %c2_36, %c0_37, %c0_38] : memref<1x4x8x128xf32, #tpu.memory_space<vmem>>, vector<1x1x8x128xf32>
    %59 = vector.shape_cast %58 : vector<1x1x8x128xf32> to vector<8x128xf32>
    %60 = vector.shape_cast %57 : vector<8x128xf32> to vector<1x1x8x128xf32>
    tpu.vector_store %arg4[%c0_35, %c2_36, %c0_37, %c0_38], %60 {strides = array<i32>} : memref<1x4x8x128xf32, #tpu.memory_space<vmem>>, vector<1x1x8x128xf32>,
    %c0_39 = arith.constant 0 : index
    %c3 = arith.constant 3 : index
    %c0_40 = arith.constant 0 : index
    %c0_41 = arith.constant 0 : index
    %61 = vector.load %arg4[%c0_39, %c3, %c0_40, %c0_41] : memref<1x4x8x128xf32, #tpu.memory_space<vmem>>, vector<1x1x8x128xf32>
    %62 = vector.shape_cast %61 : vector<1x1x8x128xf32> to vector<8x128xf32>
    %63 = vector.shape_cast %36 : vector<16x128xf32> to vector<2x8x128xf32>
    %cst_42 = arith.constant dense<0.000000e+00> : vector<8x128xf32>
    %64 = vector.multi_reduction <add>, %63, %cst_42 [0] : vector<2x8x128xf32> to vector<8x128xf32>
    %65 = arith.addf %62, %64 : vector<8x128xf32>
    %c0_43 = arith.constant 0 : index
    %c3_44 = arith.constant 3 : index
    %c0_45 = arith.constant 0 : index
    %c0_46 = arith.constant 0 : index
    %66 = vector.load %arg4[%c0_43, %c3_44, %c0_45, %c0_46] : memref<1x4x8x128xf32, #tpu.memory_space<vmem>>, vector<1x1x8x128xf32>
    %67 = vector.shape_cast %66 : vector<1x1x8x128xf32> to vector<8x128xf32>
    %68 = vector.shape_cast %65 : vector<8x128xf32> to vector<1x1x8x128xf32>
    tpu.vector_store %arg4[%c0_43, %c3_44, %c0_45, %c0_46], %68 {strides = array<i32>} : memref<1x4x8x128xf32, #tpu.memory_space<vmem>>, vector<1x1x8x128xf32>,
    return
  }
  func.func @transform_0(%arg0: i32, %arg1: i32) -> (i32, i32) {
    %c1_i32 = arith.constant 1 : i32
    %0 = arith.muli %arg0, %c1_i32 : i32
    %1 = arith.addi %0, %arg1 : i32
    %c0_i32 = arith.constant 0 : i32
    %c0_i32_0 = arith.constant 0 : i32
    return %1, %c0_i32 : i32, i32
  }
  func.func @transform_1(%arg0: i32, %arg1: i32) -> (i32, i32) {
    %c1_i32 = arith.constant 1 : i32
    %0 = arith.muli %arg0, %c1_i32 : i32
    %1 = arith.addi %0, %arg1 : i32
    %c0_i32 = arith.constant 0 : i32
    %c0_i32_0 = arith.constant 0 : i32
    return %1, %c0_i32 : i32, i32
  }
  func.func @transform_2(%arg0: i32, %arg1: i32) -> (i32, i32, i32, i32) {
    %c0_i32 = arith.constant 0 : i32
    %c0_i32_0 = arith.constant 0 : i32
    %c0_i32_1 = arith.constant 0 : i32
    %c0_i32_2 = arith.constant 0 : i32
    return %arg0, %c0_i32, %c0_i32_0, %c0_i32_1 : i32, i32, i32, i32
  }
}

</mosaic_0001>

<bundles_post_ra>
// kernel: tpu_custom_call.1
= control target key start
LH: loop header
LB: loop body
LE: loop exit
PB: predicated region body
PF: predicated region fallthrough
CT: control target
= control target key end

     0   :  { %7 = vsyncpa [#allocation3], 0  ;;  %s308_s0 = inlined_call_operand.hbm [shape: f32[16,128], index: 0, kind: input, shape index: {}]   ;;  %s309_s1 = inlined_call_operand.hbm [shape: f32[16,128], index: 1, kind: input, shape index: {}]   ;;  %s310_s2 = inlined_call_operand.hbm [shape: f32[1,4,8,128], index: 2, kind: output, shape index: {}]  }
   0x1   :  { %8 = vsyncpa [#allocation6], 0 }
   0x2   :  { %9 = vsyncpa [#allocation4], 0  ;;  %s243_s9 = smov [#allocation2]   ;;  %s171_s13 = scalar_lea.hbm %s308_s0, 256 }
   0x3   :  { %s19_s10 = sshll.u32 %s243_s9, 4  ;;  %p172_p0 = scmp.ne.s32.totalorder %s308_s0, %s171_s13  ;;  %s20_s10 = int_to_ptr.vmem [resolvable:$true] %s19_s10 }
   0x4   :  { %p175_p1 = scmp.lt.u32.totalorder %s171_s13, %s308_s0 }
   0x6   :  { %p177_p2 = pnand %p175_p1, %p172_p0 }
   0x8   :  { %180 = shalt.err (!%p177_p2)
}
   0x9   :  { %s181_s18 = scalar_lea.vmem %s20_s10, 256  ;;  %p186_p4 = scmp.lt.s32.totalorder %s20_s10, %s20_s10 }
   0xa   :  { %p182_p3 = scmp.ne.s32.totalorder %s20_s10, %s181_s18  ;;  %p187_p5 = scmp.lt.s32.totalorder %s181_s18, %s181_s18 }
   0xc   :  { %p188_p6 = por %p187_p5, %p186_p4 }
   0xe   :  { %p189_p7 = pnand %p188_p6, %p182_p3 }
  0x10   :  { %192 = shalt.err (!%p189_p7)
}
  0x11   :  { %s244_s19 = smov 128   ;;  %s245_s20 = smov 8  }
  0x12   :  { %25 = dma.hbm_to_vmem [thread:$0]  %s308_s0, 256, %s20_s10, [#allocation3], %s244_s19, %s244_s19, %s245_s20  }
  0x13   :  { %s246_s23 = smov [#allocation5]   ;;  %s193_s27 = scalar_lea.hbm %s309_s1, 256 }
  0x14   :  { %s35_s24 = sshll.u32 %s246_s23, 4  ;;  %p194_p8 = scmp.ne.s32.totalorder %s309_s1, %s193_s27  ;;  %s36_s24 = int_to_ptr.vmem [resolvable:$true] %s35_s24 }
  0x15   :  { %p197_p9 = scmp.lt.u32.totalorder %s193_s27, %s309_s1 }
  0x17   :  { %p199_p10 = pnand %p197_p9, %p194_p8 }
  0x19   :  { %202 = shalt.err (!%p199_p10)
}
  0x1a   :  { %s203_s4 = scalar_lea.vmem %s36_s24, 256  ;;  %p208_p12 = scmp.lt.s32.totalorder %s36_s24, %s36_s24 }
  0x1b   :  { %p204_p11 = scmp.ne.s32.totalorder %s36_s24, %s203_s4  ;;  %p209_p13 = scmp.lt.s32.totalorder %s203_s4, %s203_s4 }
  0x1d   :  { %p210_p0 = por %p209_p13, %p208_p12 }
  0x1f   :  { %p211_p1 = pnand %p210_p0, %p204_p11 }
  0x21   :  { %214 = shalt.err (!%p211_p1)
}
  0x22   :  { %41 = dma.hbm_to_vmem [thread:$0]  %s309_s1, 256, %s36_s24, [#allocation6], %s244_s19, %s244_s19, %s245_s20  }
  0x23   :  { %237 = dma.done.wait [#allocation3], 256  }
  0x24   :  { %238 = vsyncadd [#allocation3], 4294967040 }
  0x25   :  { %239 = dma.done.wait [#allocation6], 256  }
  0x26   :  { %240 = vsyncadd [#allocation6], 4294967040  ;;  %v60_v0 = vld [vmem:[#allocation2] sm:$0xff]  ;;  %v61_v1 = vld [vmem:[#allocation2 + $0x8] sm:$0xff]  ;;  %s247_s1 = smov [#allocation7]  }
  0x27   :  { %v62_v2 = vld [vmem:[#allocation5] sm:$0xff]  ;;  %v63_v3 = vld [vmem:[#allocation5 + $0x8] sm:$0xff]  ;;  %v149_v4 = vmul.f32 -1.442695, %v60_v0  ;;  %v150_v5 = vmul.f32 -1.442695, %v61_v1 }
  0x28   :  { %v123_v6 = vadd.f32 %v63_v3, %v62_v2  ;;  %v82_v14 = vmax.f32 %v62_v2, 1e-08  ;;  %v83_v17 = vmax.f32 %v63_v3, 1e-08  ;;  %s136_s6 = sshll.u32 %s247_s1, 4  ;;  %s137_s6 = int_to_ptr.vmem [resolvable:$true] %s136_s6 }
  0x29   :  { %159 = vpow2.f32 %v149_v4  ;;  %s215_s7 = scalar_lea.vmem %s137_s6, 512  ;;  %p220_p3 = scmp.lt.s32.totalorder %s137_s6, %s137_s6 }
  0x2a   :  { %161 = vpow2.f32 %v150_v5  ;;  %125 = vst [vmem:[#allocation7 + $0x10] sm:$0xff] %v123_v6  ;;  %v84_v23 = vmin.f32 %v82_v14, 1.0  ;;  %v85_v25 = vmin.f32 %v83_v17, 1.0  ;;  %p216_p2 = scmp.ne.s32.totalorder %s137_s6, %s215_s7  ;;  %p221_p4 = scmp.lt.s32.totalorder %s215_s7, %s215_s7 }
  0x2c   :  { %v98_v37 = vmul.f32 0.8, %v84_v23  ;;  %v99_v38 = vmul.f32 0.8, %v85_v25  ;;  %p222_p5 = por %p221_p4, %p220_p3 }
  0x2e   :  { %v100_v43 = vadd.f32 0.6, %v98_v37  ;;  %v101_v45 = vadd.f32 0.6, %v99_v38  ;;  %p223_p6 = pnand %p222_p5, %p216_p2 }
  0x33   :  { %v160_v7 = vpop.eup %159 }
  0x34   :  { %v162_v8 = vpop.eup %161  ;;  %v70_v9 = vadd.f32 1.0, %v160_v7 }
  0x35   :  { %v71_v10 = vadd.f32 1.0, %v162_v8 }
  0x36   :  { %163 = vrcp.f32 %v70_v9 }
  0x37   :  { %165 = vrcp.f32 %v71_v10 }
  0x40   :  { %v164_v11 = vpop.eup %163 }
  0x41   :  { %v166_v12 = vpop.eup %165  ;;  %v76_v13 = vmul.f32 %v164_v11, %v62_v2  ;;  %v78_v15 = vmax.f32 %v164_v11, 1e-08 }
  0x42   :  { %v77_v16 = vmul.f32 %v166_v12, %v63_v3  ;;  %v118_v18 = vadd.f32 %v166_v12, %v164_v11  ;;  %v79_v19 = vmax.f32 %v166_v12, 1e-08 }
  0x43   :  { %v80_v20 = vmin.f32 %v78_v15, 1.0 }
  0x44   :  { %v113_v21 = vadd.f32 %v77_v16, %v76_v13  ;;  %v81_v22 = vmin.f32 %v79_v19, 1.0  ;;  %120 = vst [vmem:[#allocation7 + $0x8] sm:$0xff] %v118_v18 }
  0x45   :  { %v88_v24 = vmul.f32 2.0, %v80_v20  ;;  %v86_v27 = vsub.f32 1.0, %v80_v20 }
  0x46   :  { %v89_v26 = vmul.f32 2.0, %v81_v22  ;;  %115 = vst [vmem:[#allocation7] sm:$0xff] %v113_v21  ;;  %v87_v29 = vsub.f32 1.0, %v81_v22 }
  0x47   :  { %v151_v28 = vadd.f32 -1.0, %v88_v24 }
  0x48   :  { %v152_v30 = vadd.f32 -1.0, %v89_v26 }
  0x49   :  { %v92_v31 = vmul.f32 %v151_v28, %v84_v23 }
  0x4a   :  { %v93_v32 = vmul.f32 %v152_v30, %v85_v25 }
  0x4b   :  { %v94_v33 = vadd.f32 %v92_v31, %v86_v27 }
  0x4c   :  { %v95_v34 = vadd.f32 %v93_v32, %v87_v29 }
  0x4d   :  { %167 = vlog2.f32 %v94_v33  ;;  %v96_v35 = vsub.f32 1.0, %v94_v33 }
  0x4e   :  { %169 = vlog2.f32 %v95_v34  ;;  %v97_v36 = vsub.f32 1.0, %v95_v34 }
  0x4f   :  { %v102_v39 = vmul.f32 %v96_v35, %v96_v35 }
  0x50   :  { %v103_v41 = vmul.f32 %v97_v36, %v97_v36 }
  0x57   :  { %v168_v40 = vpop.eup %167 }
  0x58   :  { %v170_v42 = vpop.eup %169  ;;  %v105_v44 = vmul.f32 0.6931472, %v168_v40 }
  0x59   :  { %v107_v46 = vmul.f32 0.6931472, %v170_v42 }
  0x5a   :  { %v108_v47 = vmul.f32 %v105_v44, %v102_v39 }
  0x5b   :  { %v109_v48 = vmul.f32 %v107_v46, %v103_v41 }
  0x5c   :  { %v110_v49 = vmul.f32 %v108_v47, %v100_v43 }
  0x5d   :  { %v111_v50 = vmul.f32 %v109_v48, %v101_v45 }
  0x5f   :  { %v128_v51 = vadd.f32 %v111_v50, %v110_v49 }
  0x61   :  { %130 = vst [vmem:[#allocation7 + $0x18] sm:$0xff] %v128_v51 }
  0x62   :  { %226 = shalt.err (!%p223_p6)
}
  0x63   :  { %s227_s10 = scalar_lea.hbm %s310_s2, 512 }
  0x64   :  { %p228_p7 = scmp.ne.s32.totalorder %s310_s2, %s227_s10  ;;  %p231_p8 = scmp.lt.u32.totalorder %s227_s10, %s310_s2 }
  0x66   :  { %p233_p9 = pnand %p231_p8, %p228_p7 }
  0x68   :  { %236 = shalt.err (!%p233_p9)
}
  0x69   :  { %142 = dma.vmem_to_hbm [thread:$0]  %s137_s6, 512, %s310_s2, [#allocation4], %s244_s19, %s244_s19, %s245_s20  }
  0x6a   :  { %241 = dma.done.wait [#allocation4], 512  }
  0x6b   :  { %242 = vsyncadd [#allocation4], 4294966784 }
  0x6c   :  { %146 = vsyncpa [#allocation3], 1 }
  0x6d   :  { %147 = vsyncpa [#allocation6], 1 }
  0x6e   :  { %148 = vsyncpa [#allocation4], 1 }

</bundles_post_ra>
